<compile_context>
chip_gen: v6e
topology: v6e:2x2x1
jax: 0.10.0
libtpu: 0.0.40
codegen_flags: <defaults>
</compile_context>

<pallas_src>
import math

import jax
import jax.numpy as jnp
from jax.experimental import pallas as pl
from jax.experimental.pallas import tpu as pltpu


LANE = 128
SUBLANE = 8
_TARGET_BLOCK_BYTES = 512 * 1024  # ~0.5 MiB per in/out block buffer


def _drop_path_kernel(scale_ref, x_ref, o_ref):
    """scale_ref: (TB, 1, 1) per-sample scale (0 or 1/keep_prob), x.dtype
       x_ref/o_ref: (TB, TR, 128) lane-dense feature tiles."""
    o_ref[...] = x_ref[...] * scale_ref[...]


def _largest_divisor(n, limit, multiple_of=1):
    """Largest d <= limit with d | n and multiple_of | d (falls back to 1)."""
    limit = max(min(n, limit), 1)
    for d in range(limit, 0, -1):
        if n % d == 0 and d % multiple_of == 0:
            return d
    return 1


def drop_path_pallas(x, p: float = 0.5, *, key=None, seed: int = 0,
                     training: bool = True):
    """Pallas implementation of DropPath.forward.

    NOTE: exactly like the reference PyTorch module, `p` is used directly as
    the *keep* probability (mask ~ Bernoulli(p), scaled by 1/p) — it is NOT
    the conventional drop probability.
    """
    if (not training) or p <= 0.0:
        return x
    if p > 1.0:
        raise ValueError(f"DropPath keep probability must be in (0, 1], got {p}")
    keep_prob = float(p)

    if key is None:
        key = jax.random.PRNGKey(seed)

    orig_shape = x.shape
    B = orig_shape[0]
    F = math.prod(orig_shape[1:])
    itemsize = jnp.dtype(x.dtype).itemsize

    # Per-sample mask hoisted out of the hot loop; kernel only streams x*scale.
    mask = jax.random.bernoulli(key, p=keep_prob, shape=(B,))
    scale = (mask.astype(jnp.float32) * (1.0 / keep_prob)).astype(x.dtype)
    scale3 = scale.reshape(B, 1, 1)

    # Lane-dense (B, R, 128) view; pad only if F isn't a whole number of
    # (8, 128) tiles (the common CNN case F % 1024 == 0 needs no pad/slice).
    tile_elems = SUBLANE * LANE
    Fp = ((F + tile_elems - 1) // tile_elems) * tile_elems
    xf = x.reshape(B, F)
    if Fp != F:
        # TODO(synk): handle the ragged tail with an in-kernel masked store
        # instead of this (rare) pad + slice round trip.
        xf = jnp.pad(xf, ((0, 0), (0, Fp - F)))
    R = Fp // LANE
    x3 = xf.reshape(B, R, LANE)

    # Feature-axis tiling: ~0.5 MiB per block keeps VMEM use constant on all
    # generations (well under v7x's 32 MiB scoped default / 64 MiB physical).
    tr_limit = max(_TARGET_BLOCK_BYTES // (LANE * itemsize), SUBLANE)
    if R <= tr_limit:
        TR = R                                   # full sample in one block
    else:
        TR = _largest_divisor(R, tr_limit, multiple_of=SUBLANE)

    # If one block covers a full sample, pack several samples per block so
    # small feature maps still get big DMAs / few grid steps.
    if TR == R:
        tb_limit = max(_TARGET_BLOCK_BYTES // (R * LANE * itemsize), 1)
        TB = _largest_divisor(B, tb_limit)
    else:
        TB = 1

    grid = (B // TB, R // TR)

    out = pl.pallas_call(
        _drop_path_kernel,
        out_shape=jax.ShapeDtypeStruct((B, R, LANE), x.dtype),
        grid_spec=pltpu.PrefetchScalarGridSpec(
            num_scalar_prefetch=0,
            grid=grid,
            in_specs=[
                pl.BlockSpec((TB, 1, 1), lambda i, j: (i, 0, 0)),      # scale
                pl.BlockSpec((TB, TR, LANE), lambda i, j: (i, j, 0)),  # x
            ],
            out_specs=pl.BlockSpec((TB, TR, LANE), lambda i, j: (i, j, 0)),
        ),
        compiler_params=pltpu.CompilerParams(
            dimension_semantics=("parallel", "parallel"),
        ),
    )(scale3, x3)

    if Fp != F:
        out = out.reshape(B, Fp)[:, :F]
    return out.reshape(orig_shape)


if __name__ == "__main__":
    root = jax.random.PRNGKey(0)
    x_key, mask_key = jax.random.split(root)

    # NCHW input, small shapes: batch=2, channels=4, spatial=16x16
    x = jax.random.normal(x_key, (2, 4, 16, 16), dtype=jnp.float32)

    p = 0.5  # used as keep_prob, exactly like the reference module
    y = drop_path_pallas(x, p=p, key=mask_key, training=True)
    y = jax.block_until_ready(y)

    assert y.shape == x.shape and y.dtype == x.dtype

    # sanity: each sample is either all-zeros or exactly x / keep_prob
    for b in range(x.shape[0]):
        dropped = bool(jnp.all(y[b] == 0))
        kept = bool(jnp.allclose(y[b], x[b] / p, rtol=1e-6, atol=1e-6))
        assert dropped or kept, f"sample {b} is neither dropped nor kept"

    # eval mode / p <= 0 is identity
    assert drop_path_pallas(x, p=p, key=mask_key, training=False) is x

    print("KERNEL_OK")
</pallas_src>

<mosaic_0001>
module attributes {stable_mosaic.version = 11 : i64} {
  func.func @_drop_path_kernel(%arg0: i32, %arg1: i32, %arg2: memref<2x1x1xf32, #tpu.memory_space<vmem>>, %arg3: memref<2x8x128xf32, #tpu.memory_space<vmem>>, %arg4: memref<2x8x128xf32, #tpu.memory_space<vmem>>) attributes {dimension_semantics = [#tpu.dimension_semantics<parallel>, #tpu.dimension_semantics<parallel>], iteration_bounds = array<i64: 1, 1>, scalar_prefetch = 0 : i64, scratch_operands = 0 : i64, tpu.core_type = #tpu.core_type<tc>, window_params = [{transform_indices = @transform_0, window_bounds = array<i64: 2, 1, 1>}, {transform_indices = @transform_1, window_bounds = array<i64: 2, 8, 128>}, {transform_indices = @transform_2, window_bounds = array<i64: 2, 8, 128>}]} {
    %c0 = arith.constant 0 : index
    %c0_0 = arith.constant 0 : index
    %c0_1 = arith.constant 0 : index
    %0 = vector.load %arg3[%c0, %c0_0, %c0_1] : memref<2x8x128xf32, #tpu.memory_space<vmem>>, vector<2x8x128xf32>
    %c0_2 = arith.constant 0 : index
    %c0_3 = arith.constant 0 : index
    %c0_4 = arith.constant 0 : index
    %1 = vector.load %arg2[%c0_2, %c0_3, %c0_4] : memref<2x1x1xf32, #tpu.memory_space<vmem>>, vector<2x1x1xf32>
    %2 = vector.broadcast %1 : vector<2x1x1xf32> to vector<2x8x128xf32>
    %3 = arith.mulf %0, %2 : vector<2x8x128xf32>
    %c0_5 = arith.constant 0 : index
    %c0_6 = arith.constant 0 : index
    %c0_7 = arith.constant 0 : index
    %4 = vector.load %arg4[%c0_5, %c0_6, %c0_7] : memref<2x8x128xf32, #tpu.memory_space<vmem>>, vector<2x8x128xf32>
    tpu.vector_store %arg4[%c0_5, %c0_6, %c0_7], %3 {strides = array<i32>} : memref<2x8x128xf32, #tpu.memory_space<vmem>>, vector<2x8x128xf32>,
    return
  }
  func.func @transform_0(%arg0: i32, %arg1: i32) -> (i32, i32, i32) {
    %c0_i32 = arith.constant 0 : i32
    %c0_i32_0 = arith.constant 0 : i32
    %c0_i32_1 = arith.constant 0 : i32
    return %arg0, %c0_i32, %c0_i32_0 : i32, i32, i32
  }
  func.func @transform_1(%arg0: i32, %arg1: i32) -> (i32, i32, i32) {
    %c0_i32 = arith.constant 0 : i32
    %c0_i32_0 = arith.constant 0 : i32
    return %arg0, %arg1, %c0_i32 : i32, i32, i32
  }
  func.func @transform_2(%arg0: i32, %arg1: i32) -> (i32, i32, i32) {
    %c0_i32 = arith.constant 0 : i32
    %c0_i32_0 = arith.constant 0 : i32
    return %arg0, %arg1, %c0_i32 : i32, i32, i32
  }
}

</mosaic_0001>

<bundles_post_ra>
// kernel: tpu_custom_call.1
= control target key start
LH: loop header
LB: loop body
LE: loop exit
PB: predicated region body
PF: predicated region fallthrough
CT: control target
= control target key end

     0   :  { %7 = vsyncpa [#allocation3], 0  ;;  %s159_s0 = inlined_call_operand.vmem [shape: f32[2,1,1], index: 0, kind: input, shape index: {}]   ;;  %s160_s1 = inlined_call_operand.hbm [shape: f32[2,8,128], index: 1, kind: input, shape index: {}]   ;;  %s161_s2 = inlined_call_operand.hbm [shape: f32[2,8,128], index: 2, kind: output, shape index: {}]  }
   0x1   :  { %8 = vsyncpa [#allocation4], 0  ;;  %s121_s9 = smov [#allocation2]  }
   0x2   :  { %s16_s10 = sshll.u32 %s121_s9, 4  ;;  %s17_s10 = int_to_ptr.vmem [resolvable:$true] %s16_s10 }
   0x3   :  { %s85_s11 = scalar_lea.vmem %s17_s10, 256  ;;  %p90_p1 = scmp.lt.s32.totalorder %s17_s10, %s17_s10 }
   0x4   :  { %p86_p0 = scmp.ne.s32.totalorder %s17_s10, %s85_s11  ;;  %p91_p2 = scmp.lt.s32.totalorder %s85_s11, %s85_s11 }
   0x6   :  { %p92_p3 = por %p91_p2, %p90_p1 }
   0x8   :  { %p93_p4 = pnand %p92_p3, %p86_p0 }
   0xa   :  { %96 = shalt.err (!%p93_p4)
}
   0xb   :  { %s122_s12 = smov 128   ;;  %s123_s13 = smov 8  }
   0xc   :  { %22 = dma.hbm_to_vmem [thread:$0]  %s160_s1, 256, %s17_s10, [#allocation3], %s122_s12, %s122_s12, %s123_s13  }
   0xd   :  { %117 = dma.done.wait [#allocation3], 256  }
   0xe   :  { %118 = vsyncadd [#allocation3], 4294967040  ;;  %v124_v0 = vmov 0   ;;  %v69_v1 = vld [vmem:[%s159_s0] ss:$0 sm:$0xff]  ;;  %v27_v6 = vld [vmem:[#allocation2 + $0x8] sm:$0xff] }
   0xf   :  { %76 = vset.pattern.permute.xlu0 %v124_v0  ;;  %v70_v2 = vld [vmem:[%s159_s0 + $0x1] ss:$0 sm:$0xff]  ;;  %s125_s20 = smov [#allocation5]  }
  0x10   :  { %41 = vperm.xlu0 %76, %v69_v1   ;;  %v26_v3 = vld [vmem:[#allocation2] sm:$0xff]  ;;  %s57_s1 = sshll.u32 %s125_s20, 4  ;;  %s58_s1 = int_to_ptr.vmem [resolvable:$true] %s57_s1 }
  0x11   :  { %s97_s21 = scalar_lea.vmem %s58_s1, 256  ;;  %p102_p6 = scmp.lt.s32.totalorder %s58_s1, %s58_s1 }
  0x12   :  { %p98_p5 = scmp.ne.s32.totalorder %s58_s1, %s97_s21  ;;  %p103_p7 = scmp.lt.s32.totalorder %s97_s21, %s97_s21 }
  0x14   :  { %45 = vperm.xlu0 %76, %v70_v2   ;;  %p104_p8 = por %p103_p7, %p102_p6 }
  0x16   :  { %p105_p9 = pnand %p104_p8, %p98_p5 }
  0x8b   :  { %v42_v4 = vpop.permute.xlu0 %41 }
  0x8c   :  { %v48_v5 = vmul.f32 %v42_v4, %v26_v3 }
  0x8e   :  { %50 = vst [vmem:[#allocation5] sm:$0xff] %v48_v5 }
  0x8f   :  { %v46_v7 = vpop.permute.xlu0 %45 }
  0x90   :  { %v49_v8 = vmul.f32 %v46_v7, %v27_v6 }
  0x92   :  { %51 = vst [vmem:[#allocation5 + $0x8] sm:$0xff] %v49_v8 }
  0x93   :  { %108 = shalt.err (!%p105_p9)
}
  0x94   :  { %63 = dma.vmem_to_hbm [thread:$0]  %s58_s1, 256, %s161_s2, [#allocation4], %s122_s12, %s122_s12, %s123_s13  }
  0x95   :  { %119 = dma.done.wait [#allocation4], 256  }
  0x96   :  { %120 = vsyncadd [#allocation4], 4294967040 }
  0x97   :  { %67 = vsyncpa [#allocation3], 1 }
  0x98   :  { %68 = vsyncpa [#allocation4], 1 }

</bundles_post_ra>
